<compile_context>
chip_gen: v5e
topology: v5e:2x2
jax: 0.10.0
libtpu: 0.0.40
codegen_flags: <defaults>
</compile_context>

<pallas_src>
import jax
import jax.numpy as jnp
from jax.experimental import pallas as pl
from jax.experimental.pallas import tpu as pltpu


def _gain_kernel(x_ref, w_ref, o_ref):
    # x_ref: (2*C_in, T)       stacked [real; imag] channels, lane tile T
    # w_ref: (2*C_out, 2*C_in) stacked complex weight [[Wr, -Wi], [Wi, Wr]]
    # o_ref: (2*C_out, T)      stacked [out_real; out_imag], lane-dense store
    o_ref[...] = jnp.dot(
        w_ref[...], x_ref[...], preferred_element_type=jnp.float32
    ).astype(o_ref.dtype)


def _round_up(x, m):
    return ((x + m - 1) // m) * m


def gain_layer_forward(x_complex, w_r, w_i, *, max_lane_tile=None):
    """x_complex: (B, C_in, H, W) complex64.
    w_r, w_i: PyTorch-style Linear weights, shape (C_out, C_in) float32.
    Returns (B, C_out, H, W) complex64."""
    B, C_in, H, W = x_complex.shape
    C_out = w_r.shape[0]
    P = H * W
    L = B * P  # total lanes: batch folded into the pixel axis

    # --- tile sizing -------------------------------------------------------
    if max_lane_tile is None:
        # Keep one step's (input + output) blocks around ~3 MiB so the
        # double-buffered working set fits every generation's default scoped
        # VMEM (v5e: 16 MiB), while steps stay multi-us of HBM traffic.
        bytes_per_lane = 4 * 2 * (C_in + C_out)
        max_lane_tile = max(512, min(32768, ((3 << 20) // bytes_per_lane) // 128 * 128))
    # Enough tiles to respect the max tile, plus a few extra steps on mid-size
    # inputs so the v7x megacore (2 TCs) has work to split -- but never
    # fragment below ~8192 lanes per step.
    n_tiles = max(pl.cdiv(L, max_lane_tile), min(8, L // 8192), 1)
    T = _round_up(pl.cdiv(L, n_tiles), 128)   # lane-dense, bounded pad waste
    n_tiles = pl.cdiv(L, T)
    L_pad = n_tiles * T

    # --- planarize pre-pass (single XLA fusion) ----------------------------
    # complex (B,C,H,W) -> f32 (2*C_in, B*H*W): real channels then imag
    # channels, batch folded into the lane axis in (b, h, w) order.
    xr = jnp.real(x_complex).astype(jnp.float32)
    xi = jnp.imag(x_complex).astype(jnp.float32)
    xs = jnp.concatenate([xr, xi], axis=1)                 # (B, 2*C_in, H, W)
    xs = jnp.moveaxis(xs, 0, 1).reshape(2 * C_in, L)       # (2*C_in, B*H*W)
    if L_pad != L:
        xs = jnp.pad(xs, ((0, 0), (0, L_pad - L)))

    # Stacked complex weight (tiny, constant block -> fetched once).
    ws = jnp.concatenate(
        [
            jnp.concatenate([w_r, -w_i], axis=1),   # -> out_real rows
            jnp.concatenate([w_i, w_r], axis=1),    # -> out_imag rows
        ],
        axis=0,
    ).astype(jnp.float32)                           # (2*C_out, 2*C_in)

    out = pl.pallas_call(
        _gain_kernel,
        out_shape=jax.ShapeDtypeStruct((2 * C_out, L_pad), jnp.float32),
        grid=(n_tiles,),
        in_specs=[
            pl.BlockSpec((2 * C_in, T), lambda j: (0, j)),
            pl.BlockSpec((2 * C_out, 2 * C_in), lambda j: (0, 0)),
        ],
        out_specs=pl.BlockSpec((2 * C_out, T), lambda j: (0, j)),
        compiler_params=pltpu.CompilerParams(
            dimension_semantics=("parallel",),
        ),
    )(xs, ws)

    # --- unfold + re-interleave post-pass (single XLA fusion) --------------
    out = out[:, :L]                                  # drop lane padding
    out = out.reshape(2, C_out, B, H, W)              # [real; imag] halves
    out_r = jnp.moveaxis(out[0], 1, 0)                # (B, C_out, H, W)
    out_i = jnp.moveaxis(out[1], 1, 0)
    return jax.lax.complex(out_r, out_i)


def _reference(x_complex, w_r, w_i):
    hi = jax.lax.Precision.HIGHEST
    xr = jnp.real(x_complex)
    xi = jnp.imag(x_complex)
    ref_r = (jnp.einsum("bchw,oc->bohw", xr, w_r, precision=hi)
             - jnp.einsum("bchw,oc->bohw", xi, w_i, precision=hi))
    ref_i = (jnp.einsum("bchw,oc->bohw", xi, w_r, precision=hi)
             + jnp.einsum("bchw,oc->bohw", xr, w_i, precision=hi))
    return ref_r, ref_i


if __name__ == "__main__":
    key = jax.random.PRNGKey(0)
    B, C_in, H, W = 2, 4, 16, 16
    C_out = 8
    init_val = 0.5

    k1, k2 = jax.random.split(key)
    x_real = jax.random.normal(k1, (B, C_in, H, W), dtype=jnp.float32)
    x_imag = jax.random.normal(k2, (B, C_in, H, W), dtype=jnp.float32)
    x = jax.lax.complex(x_real, x_imag)

    # Deterministic parameter init matching gainLayer.__init__:
    #   gain_r.weight = const(init_val), gain_i.weight = 0, shapes (C_out, C_in)
    w_r = jnp.full((C_out, C_in), init_val, dtype=jnp.float32)
    w_i = jnp.zeros((C_out, C_in), dtype=jnp.float32)

    fwd = jax.jit(gain_layer_forward)
    out = jax.block_until_ready(fwd(x, w_r, w_i))

    ref_r, ref_i = _reference(x, w_r, w_i)
    assert out.shape == (B, C_out, H, W)
    assert out.dtype == jnp.complex64
    assert jnp.allclose(jnp.real(out), ref_r, atol=1e-4, rtol=1e-4)
    assert jnp.allclose(jnp.imag(out), ref_i, atol=1e-4, rtol=1e-4)

    # Second check: ragged spatial size (exercises the lane-padding path) and
    # non-trivial imaginary weights (exercises the full complex math).
    H2, W2 = 7, 9
    k3, k4, k5, k6 = jax.random.split(key, 4)
    x2 = jax.lax.complex(
        jax.random.normal(k3, (B, C_in, H2, W2), dtype=jnp.float32),
        jax.random.normal(k4, (B, C_in, H2, W2), dtype=jnp.float32),
    )
    w_r2 = jax.random.normal(k5, (C_out, C_in), dtype=jnp.float32)
    w_i2 = jax.random.normal(k6, (C_out, C_in), dtype=jnp.float32)
    out2 = jax.block_until_ready(jax.jit(gain_layer_forward)(x2, w_r2, w_i2))
    ref_r2, ref_i2 = _reference(x2, w_r2, w_i2)
    assert out2.shape == (B, C_out, H2, W2)
    assert jnp.allclose(jnp.real(out2), ref_r2, atol=1e-4, rtol=1e-4)
    assert jnp.allclose(jnp.imag(out2), ref_i2, atol=1e-4, rtol=1e-4)

    print("KERNEL_OK")
</pallas_src>

<mosaic_0001>
module attributes {stable_mosaic.version = 11 : i64} {
  func.func @_gain_kernel(%arg0: i32, %arg1: memref<8x512xf32, #tpu.memory_space<vmem>>, %arg2: memref<16x8xf32, #tpu.memory_space<vmem>>, %arg3: memref<16x512xf32, #tpu.memory_space<vmem>>) attributes {dimension_semantics = [#tpu.dimension_semantics<parallel>], iteration_bounds = array<i64: 1>, scalar_prefetch = 0 : i64, scratch_operands = 0 : i64, tpu.core_type = #tpu.core_type<tc>, window_params = [{transform_indices = @transform_0, window_bounds = array<i64: 8, 512>}, {pipeline_mode = #tpu.pipeline_mode<synchronous>, transform_indices = @transform_1, window_bounds = array<i64: 16, 8>}, {transform_indices = @transform_2, window_bounds = array<i64: 16, 512>}]} {
    %c0 = arith.constant 0 : index
    %c0_0 = arith.constant 0 : index
    %0 = vector.load %arg2[%c0, %c0_0] : memref<16x8xf32, #tpu.memory_space<vmem>>, vector<16x8xf32>
    %c0_1 = arith.constant 0 : index
    %c0_2 = arith.constant 0 : index
    %1 = vector.load %arg1[%c0_1, %c0_2] : memref<8x512xf32, #tpu.memory_space<vmem>>, vector<8x512xf32>
    %cst = arith.constant dense<0.000000e+00> : vector<16x512xf32>
    %2 = tpu.matmul %0, %1, %cst {dimension_numbers = #tpu.dot_dimension_numbers<[1], [0], [0], [1], [0, 0, 1, 1], [], []>} : vector<16x8xf32>, vector<8x512xf32>, vector<16x512xf32> -> vector<16x512xf32>
    %c0_3 = arith.constant 0 : index
    %c0_4 = arith.constant 0 : index
    %3 = vector.load %arg3[%c0_3, %c0_4] : memref<16x512xf32, #tpu.memory_space<vmem>>, vector<16x512xf32>
    tpu.vector_store %arg3[%c0_3, %c0_4], %2 {strides = array<i32>} : memref<16x512xf32, #tpu.memory_space<vmem>>, vector<16x512xf32>,
    return
  }
  func.func @transform_0(%arg0: i32) -> (i32, i32) {
    %c0_i32 = arith.constant 0 : i32
    %c0_i32_0 = arith.constant 0 : i32
    return %c0_i32, %arg0 : i32, i32
  }
  func.func @transform_1(%arg0: i32) -> (i32, i32) {
    %c0_i32 = arith.constant 0 : i32
    %c0_i32_0 = arith.constant 0 : i32
    %c0_i32_1 = arith.constant 0 : i32
    return %c0_i32, %c0_i32_0 : i32, i32
  }
  func.func @transform_2(%arg0: i32) -> (i32, i32) {
    %c0_i32 = arith.constant 0 : i32
    %c0_i32_0 = arith.constant 0 : i32
    return %c0_i32, %arg0 : i32, i32
  }
}

</mosaic_0001>

<bundles_post_ra>
// kernel: neg.1
= control target key start
LH: loop header
LB: loop body
LE: loop exit
PB: predicated region body
PF: predicated region fallthrough
CT: control target
= control target key end

     0   :  { %s24_s0 = inlined_call_operand.vmem [shape: f32[8,4], index: 0, kind: input, shape index: {}]   ;;  %s25_s1 = inlined_call_operand.vmem [shape: f32[8,4], index: 1, kind: output, shape index: {}]  }
   0x1   :  { %v2_v0 = vld [vmem:[%s24_s0] sm:$0xff] }
   0x2   :  { %v5_v1 = vxor.u32 2147483648, %v2_v0 }
   0x4   :  { %7 = vst [vmem:[%s25_s1] sm:$0xff] %v5_v1 }

// kernel: custom-call.1
= control target key start
LH: loop header
LB: loop body
LE: loop exit
PB: predicated region body
PF: predicated region fallthrough
CT: control target
= control target key end

     0   :  { %s56_s0 = inlined_call_operand.hbm [shape: c64[2,4,16,16], index: 0, kind: input, shape index: {}]   ;;  %s57_s1 = inlined_call_operand.vmem [shape: f32[2,4,16,16], index: 1, kind: output, shape index: {}]  }
   0x1   :  { %s2_s8 = scalar_lea.hbm %s56_s0, 128 }
   0x2   :  { %3 = vsyncpa [#allocation0], 0  ;;  %s5_s9 = sshll.u32 %s2_s8, 4  ;;  %s7_s12 = sshll.u32 %s57_s1, 4  ;;  %s6_s9 = int_to_ptr.hbm [resolvable:$true] %s5_s9  ;;  %s8_s12 = int_to_ptr.vmem [resolvable:$true] %s7_s12 }
   0x3   :  { %10 = dma.hbm_to_vmem [thread:$0]  %s6_s9, 2048, %s8_s12, [#allocation0] }
   0x4   :  { %38 = dma.done.wait [#allocation0], 2048  }
   0x5   :  { %39 = vsyncadd [#allocation0], 4294965248 }
   0x6   :  { %13 = vsyncpa [#allocation0], 1 }

// kernel: custom-call
= control target key start
LH: loop header
LB: loop body
LE: loop exit
PB: predicated region body
PF: predicated region fallthrough
CT: control target
= control target key end

     0   :  { %2 = vsyncpa [#allocation0], 0  ;;  %s55_s0 = inlined_call_operand.hbm [shape: c64[2,4,16,16], index: 0, kind: input, shape index: {}]   ;;  %s56_s1 = inlined_call_operand.vmem [shape: f32[2,4,16,16], index: 1, kind: output, shape index: {}]  }
   0x1   :  { %s4_s8 = sshll.u32 %s55_s0, 4  ;;  %s6_s11 = sshll.u32 %s56_s1, 4  ;;  %s5_s8 = int_to_ptr.hbm [resolvable:$true] %s4_s8  ;;  %s7_s11 = int_to_ptr.vmem [resolvable:$true] %s6_s11 }
   0x2   :  { %9 = dma.hbm_to_vmem [thread:$0]  %s5_s8, 2048, %s7_s11, [#allocation0] }
   0x3   :  { %37 = dma.done.wait [#allocation0], 2048  }
   0x4   :  { %38 = vsyncadd [#allocation0], 4294965248 }
   0x5   :  { %12 = vsyncpa [#allocation0], 1 }

// kernel: squeeze.2
= control target key start
LH: loop header
LB: loop body
LE: loop exit
PB: predicated region body
PF: predicated region fallthrough
CT: control target
= control target key end

     0   :  { %vm79_vm0 = vcmask 1047556   ;;  %s579_s14 = smov 112   ;;  %s580_s27 = smov 96   ;;  %vm3_vm1 = vcmask 130048   ;;  %s1156_s0 = inlined_call_operand.vmem [shape: f32[8,512], index: 0, kind: input, shape index: {}]   ;;  %s1157_s1 = inlined_call_operand.vmem [shape: f32[8,2,16,16], index: 1, kind: output, shape index: {}]  }
   0x1   :  { %v76_v0 = vld [vmem:[%s1156_s0] ss:$8 sm:$0xf]   ;;  %v467_v1 = vld [vmem:[%s1156_s0 - $0x1f] ss:$8 sm:$0xf0]  }
   0x2   :  { %v80_v2 = vsel %vm79_vm0, %v467_v1, %v76_v0  ;;  %v474_v3 = vld [vmem:[%s1156_s0 + $0x4] ss:$8 sm:$0xf]   ;;  %v475_v4 = vld [vmem:[%s1156_s0 - $0x1b] ss:$8 sm:$0xf0]  }
   0x3   :  { %81 = vrot.lane.b32.xlu0 %v80_v2, %s579_s14  ;;  %v106_v5 = vsel %vm79_vm0, %v475_v4, %v474_v3  ;;  %v470_v6 = vld [vmem:[%s1156_s0 + $0x2] ss:$8 sm:$0xf]   ;;  %v471_v7 = vld [vmem:[%s1156_s0 - $0x1d] ss:$8 sm:$0xf0]  }
   0x4   :  { %107 = vrot.lane.b32.xlu1 %v106_v5, %s579_s14  ;;  %v478_v8 = vld [vmem:[%s1156_s0 + $0x6] ss:$8 sm:$0xf]   ;;  %v479_v9 = vld [vmem:[%s1156_s0 - $0x19] ss:$8 sm:$0xf0]   ;;  %v93_v10 = vsel %vm79_vm0, %v471_v7, %v470_v6 }
   0x5   :  { %v127_v11 = vld [vmem:[%s1156_s0] ss:$8 sm:$0xf]   ;;  %v119_v12 = vsel %vm79_vm0, %v479_v9, %v478_v8  ;;  %v482_v13 = vld [vmem:[%s1156_s0 - $0x1f] ss:$8 sm:$0xf0]  }
   0x6   :  { %v131_v14 = vsel %vm79_vm0, %v482_v13, %v127_v11  ;;  %v489_v15 = vld [vmem:[%s1156_s0 + $0x4] ss:$8 sm:$0xf]   ;;  %v490_v16 = vld [vmem:[%s1156_s0 - $0x1b] ss:$8 sm:$0xf0]  }
   0x7   :  { %132 = vrot.lane.b32.xlu2 %v131_v14, %s580_s27  ;;  %v485_v17 = vld [vmem:[%s1156_s0 + $0x2] ss:$8 sm:$0xf]   ;;  %v486_v18 = vld [vmem:[%s1156_s0 - $0x1d] ss:$8 sm:$0xf0]   ;;  %v157_v21 = vsel %vm79_vm0, %v490_v16, %v489_v15 }
   0x8   :  { %v493_v19 = vld [vmem:[%s1156_s0 + $0x6] ss:$8 sm:$0xf]   ;;  %v494_v20 = vld [vmem:[%s1156_s0 - $0x19] ss:$8 sm:$0xf0]   ;;  %v144_v22 = vsel %vm79_vm0, %v486_v18, %v485_v17 }
   0x9   :  { %v170_v23 = vsel %vm79_vm0, %v494_v20, %v493_v19  ;;  %v500_v24 = vld [vmem:[%s1156_s0 + $0x2] ss:$8 sm:$0xf]   ;;  %v501_v25 = vld [vmem:[%s1156_s0 - $0x1d] ss:$8 sm:$0xf0]  }
   0xa   :  { %v178_v26 = vld [vmem:[%s1156_s0] ss:$8 sm:$0xf]   ;;  %v497_v27 = vld [vmem:[%s1156_s0 - $0x1f] ss:$8 sm:$0xf0]   ;;  %v195_v30 = vsel %vm79_vm0, %v501_v25, %v500_v24 }
   0xb   :  { %94 = vrot.lane.b32.xlu0 %v93_v10, %s579_s14  ;;  %v504_v28 = vld [vmem:[%s1156_s0 + $0x4] ss:$8 sm:$0xf]   ;;  %v505_v29 = vld [vmem:[%s1156_s0 - $0x1b] ss:$8 sm:$0xf0]   ;;  %v182_v31 = vsel %vm79_vm0, %v497_v27, %v178_v26 }
   0xc   :  { %120 = vrot.lane.b32.xlu1 %v119_v12, %s579_s14  ;;  %v208_v32 = vsel %vm79_vm0, %v505_v29, %v504_v28  ;;  %s581_s23 = smov 80   ;;  %v229_v33 = vld [vmem:[%s1156_s0] ss:$8 sm:$0xf]   ;;  %s582_s11 = smov 64  }
   0xd   :  { %v512_v34 = vld [vmem:[%s1156_s0 - $0x1f] ss:$8 sm:$0xf0]   ;;  %v508_v35 = vld [vmem:[%s1156_s0 + $0x6] ss:$8 sm:$0xf]  }
   0xe   :  { %v509_v36 = vld [vmem:[%s1156_s0 - $0x19] ss:$8 sm:$0xf0]   ;;  %v382_v37 = vld [vmem:[%s1156_s0] ss:$8 sm:$0xf]   ;;  %v233_v42 = vsel %vm79_vm0, %v512_v34, %v229_v33 }
   0xf   :  { %145 = vrot.lane.b32.xlu2 %v144_v22, %s580_s27  ;;  %v557_v38 = vld [vmem:[%s1156_s0 - $0x1f] ss:$8 sm:$0xf0]   ;;  %v515_v39 = vld [vmem:[%s1156_s0 + $0x2] ss:$8 sm:$0xf]   ;;  %v221_v43 = vsel %vm79_vm0, %v509_v36, %v508_v35 }
  0x10   :  { %v516_v40 = vld [vmem:[%s1156_s0 - $0x1d] ss:$8 sm:$0xf0]   ;;  %v386_v41 = vsel %vm79_vm0, %v557_v38, %v382_v37  ;;  %v523_v45 = vld [vmem:[%s1156_s0 + $0x6] ss:$8 sm:$0xf]  }
  0x11   :  { %v246_v44 = vsel %vm79_vm0, %v516_v40, %v515_v39  ;;  %v524_v46 = vld [vmem:[%s1156_s0 - $0x19] ss:$8 sm:$0xf0]   ;;  %v519_v47 = vld [vmem:[%s1156_s0 + $0x4] ss:$8 sm:$0xf]  }
  0x12   :  { %v520_v48 = vld [vmem:[%s1156_s0 - $0x1b] ss:$8 sm:$0xf0]   ;;  %v560_v49 = vld [vmem:[%s1156_s0 + $0x2] ss:$8 sm:$0xf]   ;;  %v272_v57 = vsel %vm79_vm0, %v524_v46, %v523_v45 }
  0x13   :  { %158 = vrot.lane.b32.xlu0 %v157_v21, %s580_s27  ;;  %v561_v50 = vld [vmem:[%s1156_s0 - $0x1d] ss:$8 sm:$0xf0]   ;;  %v568_v52 = vld [vmem:[%s1156_s0 + $0x6] ss:$8 sm:$0xf]   ;;  %v259_v58 = vsel %vm79_vm0, %v520_v48, %v519_v47 }
  0x14   :  { %171 = vrot.lane.b32.xlu1 %v170_v23, %s580_s27  ;;  %v399_v51 = vsel %vm79_vm0, %v561_v50, %v560_v49  ;;  %v569_v53 = vld [vmem:[%s1156_s0 - $0x19] ss:$8 sm:$0xf0]   ;;  %v280_v54 = vld [vmem:[%s1156_s0] ss:$8 sm:$0xf]  }
  0x15   :  { %v527_v55 = vld [vmem:[%s1156_s0 - $0x1f] ss:$8 sm:$0xf0]   ;;  %v425_v56 = vsel %vm79_vm0, %v569_v53, %v568_v52  ;;  %v534_v60 = vld [vmem:[%s1156_s0 + $0x4] ss:$8 sm:$0xf]  }
  0x16   :  { %v284_v59 = vsel %vm79_vm0, %v527_v55, %v280_v54  ;;  %v535_v61 = vld [vmem:[%s1156_s0 - $0x1b] ss:$8 sm:$0xf0]   ;;  %v530_v62 = vld [vmem:[%s1156_s0 + $0x2] ss:$8 sm:$0xf]  }
  0x17   :  { %183 = vrot.lane.b32.xlu2 %v182_v31, %s581_s23  ;;  %v531_v63 = vld [vmem:[%s1156_s0 - $0x1d] ss:$8 sm:$0xf0]   ;;  %v553_v0 = vld [vmem:[%s1156_s0 + $0x6] ss:$8 sm:$0xf]   ;;  %v310_v8 = vsel %vm79_vm0, %v535_v61, %v534_v60 }
  0x18   :  { %v554_v1 = vld [vmem:[%s1156_s0 - $0x19] ss:$8 sm:$0xf0]   ;;  %v564_v3 = vld [vmem:[%s1156_s0 + $0x4] ss:$8 sm:$0xf]   ;;  %v297_v9 = vsel %vm79_vm0, %v531_v63, %v530_v62 }
  0x19   :  { %v374_v2 = vsel %vm79_vm0, %v554_v1, %v553_v0  ;;  %v565_v4 = vld [vmem:[%s1156_s0 - $0x1b] ss:$8 sm:$0xf0]   ;;  %v538_v5 = vld [vmem:[%s1156_s0 + $0x6] ss:$8 sm:$0xf]  }
  0x1a   :  { %v539_v6 = vld [vmem:[%s1156_s0 - $0x19] ss:$8 sm:$0xf0]   ;;  %v412_v7 = vsel %vm79_vm0, %v565_v4, %v564_v3  ;;  %v545_v11 = vld [vmem:[%s1156_s0 + $0x2] ss:$8 sm:$0xf]  }
  0x1b   :  { %196 = vrot.lane.b32.xlu0 %v195_v30, %s581_s23  ;;  %v323_v10 = vsel %vm79_vm0, %v539_v6, %v538_v5  ;;  %v546_v12 = vld [vmem:[%s1156_s0 - $0x1d] ss:$8 sm:$0xf0]   ;;  %v331_v13 = vld [vmem:[%s1156_s0] ss:$8 sm:$0xf]  }
  0x1c   :  { %209 = vrot.lane.b32.xlu1 %v208_v32, %s581_s23  ;;  %v542_v14 = vld [vmem:[%s1156_s0 - $0x1f] ss:$8 sm:$0xf0]   ;;  %v549_v15 = vld [vmem:[%s1156_s0 + $0x4] ss:$8 sm:$0xf]   ;;  %v348_v17 = vsel %vm79_vm0, %v546_v12, %v545_v11 }
  0x1d   :  { %v550_v16 = vld [vmem:[%s1156_s0 - $0x1b] ss:$8 sm:$0xf0]   ;;  %v335_v18 = vsel %vm79_vm0, %v542_v14, %v331_v13  ;;  %s584_s7 = smov 32   ;;  %s585_s8 = smov 16  }
  0x1e   :  { %v361_v19 = vsel %vm79_vm0, %v550_v16, %v549_v15  ;;  %v2_v40 = vld [vmem:[%s1156_s0] sm:$0xff]   ;;  %v440_v48 = vld [vmem:[%s1156_s0 + $0x8] sm:$0xff]   ;;  %v449_v50 = vld [vmem:[%s1156_s0 + $0x10] sm:$0xff]  }
  0x1f   :  { %222 = vrot.lane.b32.xlu2 %v221_v43, %s581_s23  ;;  %4 = vst.msk [vmem:[%s1157_s1] sm:$0x1] %vm3_vm1, %v2_v40  }
  0x20   :  { %433 = vst.msk [vmem:[%s1157_s1 + $0x1f] sm:$0x2] %vm3_vm1, %v2_v40  }
  0x21   :  { %434 = vst.msk [vmem:[%s1157_s1 + $0x3e] sm:$0x4] %vm3_vm1, %v2_v40  }
  0x22   :  { %435 = vst.msk [vmem:[%s1157_s1 + $0x5d] sm:$0x8] %vm3_vm1, %v2_v40  }
  0x23   :  { %234 = vrot.lane.b32.xlu0 %v233_v42, %s582_s11  ;;  %436 = vst.msk [vmem:[%s1157_s1 + $0x7c] sm:$0x10] %vm3_vm1, %v2_v40  }
  0x24   :  { %247 = vrot.lane.b32.xlu1 %v246_v44, %s582_s11  ;;  %437 = vst.msk [vmem:[%s1157_s1 + $0x9b] sm:$0x20] %vm3_vm1, %v2_v40  }
  0x25   :  { %438 = vst.msk [vmem:[%s1157_s1 + $0xba] sm:$0x40] %vm3_vm1, %v2_v40  }
  0x26   :  { %439 = vst.msk [vmem:[%s1157_s1 + $0xd9] sm:$0x80] %vm3_vm1, %v2_v40  }
  0x27   :  { %260 = vrot.lane.b32.xlu2 %v259_v58, %s582_s11  ;;  %441 = vst.msk [vmem:[%s1157_s1 + $0x8] sm:$0x1] %vm3_vm1, %v440_v48  }
  0x28   :  { %442 = vst.msk [vmem:[%s1157_s1 + $0x27] sm:$0x2] %vm3_vm1, %v440_v48  }
  0x29   :  { %443 = vst.msk [vmem:[%s1157_s1 + $0x46] sm:$0x4] %vm3_vm1, %v440_v48  }
  0x2a   :  { %444 = vst.msk [vmem:[%s1157_s1 + $0x65] sm:$0x8] %vm3_vm1, %v440_v48  }
  0x2b   :  { %273 = vrot.lane.b32.xlu0 %v272_v57, %s582_s11  ;;  %s583_s11 = smov 48   ;;  %445 = vst.msk [vmem:[%s1157_s1 + $0x84] sm:$0x10] %vm3_vm1, %v440_v48  }
  0x2c   :  { %285 = vrot.lane.b32.xlu1 %v284_v59, %s583_s11  ;;  %446 = vst.msk [vmem:[%s1157_s1 + $0xa3] sm:$0x20] %vm3_vm1, %v440_v48  }
  0x2d   :  { %447 = vst.msk [vmem:[%s1157_s1 + $0xc2] sm:$0x40] %vm3_vm1, %v440_v48  }
  0x2e   :  { %448 = vst.msk [vmem:[%s1157_s1 + $0xe1] sm:$0x80] %vm3_vm1, %v440_v48  }
  0x2f   :  { %298 = vrot.lane.b32.xlu2 %v297_v9, %s583_s11  ;;  %450 = vst.msk [vmem:[%s1157_s1 + $0x10] sm:$0x1] %vm3_vm1, %v449_v50  }
  0x30   :  { %451 = vst.msk [vmem:[%s1157_s1 + $0x2f] sm:$0x2] %vm3_vm1, %v449_v50  }
  0x31   :  { %452 = vst.msk [vmem:[%s1157_s1 + $0x4e] sm:$0x4] %vm3_vm1, %v449_v50  }
  0x32   :  { %453 = vst.msk [vmem:[%s1157_s1 + $0x6d] sm:$0x8] %vm3_vm1, %v449_v50  }
  0x33   :  { %311 = vrot.lane.b32.xlu0 %v310_v8, %s583_s11  ;;  %454 = vst.msk [vmem:[%s1157_s1 + $0x8c] sm:$0x10] %vm3_vm1, %v449_v50  }
  0x34   :  { %324 = vrot.lane.b32.xlu1 %v323_v10, %s583_s11  ;;  %455 = vst.msk [vmem:[%s1157_s1 + $0xab] sm:$0x20] %vm3_vm1, %v449_v50  }
  0x35   :  { %456 = vst.msk [vmem:[%s1157_s1 + $0xca] sm:$0x40] %vm3_vm1, %v449_v50  }
  0x36   :  { %457 = vst.msk [vmem:[%s1157_s1 + $0xe9] sm:$0x80] %vm3_vm1, %v449_v50  }
  0x37   :  { %336 = vrot.lane.b32.xlu2 %v335_v18, %s584_s7 }
  0x3b   :  { %349 = vrot.lane.b32.xlu0 %v348_v17, %s584_s7 }
  0x3c   :  { %362 = vrot.lane.b32.xlu1 %v361_v19, %s584_s7 }
  0x3f   :  { %375 = vrot.lane.b32.xlu2 %v374_v2, %s584_s7 }
  0x43   :  { %387 = vrot.lane.b32.xlu0 %v386_v41, %s585_s8 }
  0x44   :  { %400 = vrot.lane.b32.xlu1 %v399_v51, %s585_s8  ;;  %v458_v51 = vld [vmem:[%s1156_s0 + $0x18] sm:$0xff]  }
  0x45   :  { %459 = vst.msk [vmem:[%s1157_s1 + $0x18] sm:$0x1] %vm3_vm1, %v458_v51  }
  0x46   :  { %460 = vst.msk [vmem:[%s1157_s1 + $0x37] sm:$0x2] %vm3_vm1, %v458_v51  }
  0x47   :  { %413 = vrot.lane.b32.xlu2 %v412_v7, %s585_s8  ;;  %461 = vst.msk [vmem:[%s1157_s1 + $0x56] sm:$0x4] %vm3_vm1, %v458_v51  }
  0x48   :  { %462 = vst.msk [vmem:[%s1157_s1 + $0x75] sm:$0x8] %vm3_vm1, %v458_v51  }
  0x49   :  { %463 = vst.msk [vmem:[%s1157_s1 + $0x94] sm:$0x10] %vm3_vm1, %v458_v51  }
  0x4a   :  { %464 = vst.msk [vmem:[%s1157_s1 + $0xb3] sm:$0x20] %vm3_vm1, %v458_v51  }
  0x4b   :  { %426 = vrot.lane.b32.xlu0 %v425_v56, %s585_s8  ;;  %465 = vst.msk [vmem:[%s1157_s1 + $0xd2] sm:$0x40] %vm3_vm1, %v458_v51  }
  0x4c   :  { %466 = vst.msk [vmem:[%s1157_s1 + $0xf1] sm:$0x80] %vm3_vm1, %v458_v51  }
  0x61   :  { %v133_v20 = vpop.permute.xlu2 %132  }
  0x62   :  { %483 = vst.msk [vmem:[%s1157_s1 + $0x2] ss:$8 sm:$0xf] %vm3_vm1, %v133_v20  }
  0x63   :  { %484 = vst.msk [vmem:[%s1157_s1 + $0x2] ss:$8 sm:$0xf0] %vm3_vm1, %v133_v20  }
  0x69   :  { %v146_v21 = vpop.permute.xlu2 %145  }
  0x6a   :  { %487 = vst.msk [vmem:[%s1157_s1 + $0x42] ss:$8 sm:$0xf] %vm3_vm1, %v146_v21  }
  0x6b   :  { %488 = vst.msk [vmem:[%s1157_s1 + $0x42] ss:$8 sm:$0xf0] %vm3_vm1, %v146_v21  }
  0x71   :  { %v184_v23 = vpop.permute.xlu2 %183  }
  0x72   :  { %498 = vst.msk [vmem:[%s1157_s1 + $0x3] ss:$8 sm:$0xf] %vm3_vm1, %v184_v23  }
  0x73   :  { %499 = vst.msk [vmem:[%s1157_s1 + $0x3] ss:$8 sm:$0xf0] %vm3_vm1, %v184_v23  }
  0x75   :  { %v82_v22 = vpop.permute.xlu0 %81  }
  0x76   :  { %468 = vst.msk [vmem:[%s1157_s1 + $0x1] ss:$8 sm:$0xf] %vm3_vm1, %v82_v22   ;;  %v108_v24 = vpop.permute.xlu1 %107  }
  0x77   :  { %469 = vst.msk [vmem:[%s1157_s1 + $0x1] ss:$8 sm:$0xf0] %vm3_vm1, %v82_v22  }
  0x78   :  { %476 = vst.msk [vmem:[%s1157_s1 + $0x81] ss:$8 sm:$0xf] %vm3_vm1, %v108_v24  }
  0x79   :  { %477 = vst.msk [vmem:[%s1157_s1 + $0x81] ss:$8 sm:$0xf0] %vm3_vm1, %v108_v24   ;;  %v223_v26 = vpop.permute.xlu2 %222  }
  0x7a   :  { %510 = vst.msk [vmem:[%s1157_s1 + $0xc3] ss:$8 sm:$0xf] %vm3_vm1, %v223_v26  }
  0x7b   :  { %511 = vst.msk [vmem:[%s1157_s1 + $0xc3] ss:$8 sm:$0xf0] %vm3_vm1, %v223_v26  }
  0x7d   :  { %v95_v25 = vpop.permute.xlu0 %94  }
  0x7e   :  { %472 = vst.msk [vmem:[%s1157_s1 + $0x41] ss:$8 sm:$0xf] %vm3_vm1, %v95_v25   ;;  %v121_v27 = vpop.permute.xlu1 %120  }
  0x7f   :  { %473 = vst.msk [vmem:[%s1157_s1 + $0x41] ss:$8 sm:$0xf0] %vm3_vm1, %v95_v25  }
  0x80   :  { %480 = vst.msk [vmem:[%s1157_s1 + $0xc1] ss:$8 sm:$0xf] %vm3_vm1, %v121_v27  }
  0x81   :  { %481 = vst.msk [vmem:[%s1157_s1 + $0xc1] ss:$8 sm:$0xf0] %vm3_vm1, %v121_v27   ;;  %v261_v29 = vpop.permute.xlu2 %260  }
  0x82   :  { %521 = vst.msk [vmem:[%s1157_s1 + $0x84] ss:$8 sm:$0xf] %vm3_vm1, %v261_v29  }
  0x83   :  { %522 = vst.msk [vmem:[%s1157_s1 + $0x84] ss:$8 sm:$0xf0] %vm3_vm1, %v261_v29  }
  0x85   :  { %v159_v28 = vpop.permute.xlu0 %158  }
  0x86   :  { %491 = vst.msk [vmem:[%s1157_s1 + $0x82] ss:$8 sm:$0xf] %vm3_vm1, %v159_v28   ;;  %v172_v30 = vpop.permute.xlu1 %171  }
  0x87   :  { %492 = vst.msk [vmem:[%s1157_s1 + $0x82] ss:$8 sm:$0xf0] %vm3_vm1, %v159_v28  }
  0x88   :  { %495 = vst.msk [vmem:[%s1157_s1 + $0xc2] ss:$8 sm:$0xf] %vm3_vm1, %v172_v30  }
  0x89   :  { %496 = vst.msk [vmem:[%s1157_s1 + $0xc2] ss:$8 sm:$0xf0] %vm3_vm1, %v172_v30   ;;  %v299_v32 = vpop.permute.xlu2 %298  }
  0x8a   :  { %532 = vst.msk [vmem:[%s1157_s1 + $0x45] ss:$8 sm:$0xf] %vm3_vm1, %v299_v32  }
  0x8b   :  { %533 = vst.msk [vmem:[%s1157_s1 + $0x45] ss:$8 sm:$0xf0] %vm3_vm1, %v299_v32  }
  0x8d   :  { %v197_v31 = vpop.permute.xlu0 %196  }
  0x8e   :  { %502 = vst.msk [vmem:[%s1157_s1 + $0x43] ss:$8 sm:$0xf] %vm3_vm1, %v197_v31   ;;  %v210_v33 = vpop.permute.xlu1 %209  }
  0x8f   :  { %503 = vst.msk [vmem:[%s1157_s1 + $0x43] ss:$8 sm:$0xf0] %vm3_vm1, %v197_v31  }
  0x90   :  { %506 = vst.msk [vmem:[%s1157_s1 + $0x83] ss:$8 sm:$0xf] %vm3_vm1, %v210_v33  }
  0x91   :  { %507 = vst.msk [vmem:[%s1157_s1 + $0x83] ss:$8 sm:$0xf0] %vm3_vm1, %v210_v33   ;;  %v337_v35 = vpop.permute.xlu2 %336  }
  0x92   :  { %543 = vst.msk [vmem:[%s1157_s1 + $0x6] ss:$8 sm:$0xf] %vm3_vm1, %v337_v35  }
  0x93   :  { %544 = vst.msk [vmem:[%s1157_s1 + $0x6] ss:$8 sm:$0xf0] %vm3_vm1, %v337_v35  }
  0x95   :  { %v235_v34 = vpop.permute.xlu0 %234  }
  0x96   :  { %513 = vst.msk [vmem:[%s1157_s1 + $0x4] ss:$8 sm:$0xf] %vm3_vm1, %v235_v34   ;;  %v248_v36 = vpop.permute.xlu1 %247  }
  0x97   :  { %514 = vst.msk [vmem:[%s1157_s1 + $0x4] ss:$8 sm:$0xf0] %vm3_vm1, %v235_v34  }
  0x98   :  { %517 = vst.msk [vmem:[%s1157_s1 + $0x44] ss:$8 sm:$0xf] %vm3_vm1, %v248_v36  }
  0x99   :  { %518 = vst.msk [vmem:[%s1157_s1 + $0x44] ss:$8 sm:$0xf0] %vm3_vm1, %v248_v36   ;;  %v376_v38 = vpop.permute.xlu2 %375  }
  0x9a   :  { %555 = vst.msk [vmem:[%s1157_s1 + $0xc6] ss:$8 sm:$0xf] %vm3_vm1, %v376_v38  }
  0x9b   :  { %556 = vst.msk [vmem:[%s1157_s1 + $0xc6] ss:$8 sm:$0xf0] %vm3_vm1, %v376_v38  }
  0x9d   :  { %v274_v37 = vpop.permute.xlu0 %273  }
  0x9e   :  { %525 = vst.msk [vmem:[%s1157_s1 + $0xc4] ss:$8 sm:$0xf] %vm3_vm1, %v274_v37   ;;  %v286_v39 = vpop.permute.xlu1 %285  }
  0x9f   :  { %526 = vst.msk [vmem:[%s1157_s1 + $0xc4] ss:$8 sm:$0xf0] %vm3_vm1, %v274_v37  }
  0xa0   :  { %528 = vst.msk [vmem:[%s1157_s1 + $0x5] ss:$8 sm:$0xf] %vm3_vm1, %v286_v39  }
  0xa1   :  { %529 = vst.msk [vmem:[%s1157_s1 + $0x5] ss:$8 sm:$0xf0] %vm3_vm1, %v286_v39   ;;  %v414_v42 = vpop.permute.xlu2 %413  }
  0xa2   :  { %566 = vst.msk [vmem:[%s1157_s1 + $0x87] ss:$8 sm:$0xf] %vm3_vm1, %v414_v42  }
  0xa3   :  { %567 = vst.msk [vmem:[%s1157_s1 + $0x87] ss:$8 sm:$0xf0] %vm3_vm1, %v414_v42  }
  0xa5   :  { %v312_v41 = vpop.permute.xlu0 %311  }
  0xa6   :  { %536 = vst.msk [vmem:[%s1157_s1 + $0x85] ss:$8 sm:$0xf] %vm3_vm1, %v312_v41   ;;  %v325_v43 = vpop.permute.xlu1 %324  }
  0xa7   :  { %537 = vst.msk [vmem:[%s1157_s1 + $0x85] ss:$8 sm:$0xf0] %vm3_vm1, %v312_v41  }
  0xa8   :  { %540 = vst.msk [vmem:[%s1157_s1 + $0xc5] ss:$8 sm:$0xf] %vm3_vm1, %v325_v43  }
  0xa9   :  { %541 = vst.msk [vmem:[%s1157_s1 + $0xc5] ss:$8 sm:$0xf0] %vm3_vm1, %v325_v43  }
  0xad   :  { %v350_v44 = vpop.permute.xlu0 %349  }
  0xae   :  { %547 = vst.msk [vmem:[%s1157_s1 + $0x46] ss:$8 sm:$0xf] %vm3_vm1, %v350_v44   ;;  %v363_v45 = vpop.permute.xlu1 %362  }
  0xaf   :  { %548 = vst.msk [vmem:[%s1157_s1 + $0x46] ss:$8 sm:$0xf0] %vm3_vm1, %v350_v44  }
  0xb0   :  { %551 = vst.msk [vmem:[%s1157_s1 + $0x86] ss:$8 sm:$0xf] %vm3_vm1, %v363_v45  }
  0xb1   :  { %552 = vst.msk [vmem:[%s1157_s1 + $0x86] ss:$8 sm:$0xf0] %vm3_vm1, %v363_v45  }
  0xb5   :  { %v388_v46 = vpop.permute.xlu0 %387  }
  0xb6   :  { %558 = vst.msk [vmem:[%s1157_s1 + $0x7] ss:$8 sm:$0xf] %vm3_vm1, %v388_v46   ;;  %v401_v47 = vpop.permute.xlu1 %400  }
  0xb7   :  { %559 = vst.msk [vmem:[%s1157_s1 + $0x7] ss:$8 sm:$0xf0] %vm3_vm1, %v388_v46  }
  0xb8   :  { %562 = vst.msk [vmem:[%s1157_s1 + $0x47] ss:$8 sm:$0xf] %vm3_vm1, %v401_v47  }
  0xb9   :  { %563 = vst.msk [vmem:[%s1157_s1 + $0x47] ss:$8 sm:$0xf0] %vm3_vm1, %v401_v47  }
  0xbd   :  { %v427_v49 = vpop.permute.xlu0 %426  }
  0xbe   :  { %570 = vst.msk [vmem:[%s1157_s1 + $0xc7] ss:$8 sm:$0xf] %vm3_vm1, %v427_v49  }
  0xbf   :  { %571 = vst.msk [vmem:[%s1157_s1 + $0xc7] ss:$8 sm:$0xf0] %vm3_vm1, %v427_v49  }

// kernel: custom-call.2
= control target key start
LH: loop header
LB: loop body
LE: loop exit
PB: predicated region body
PF: predicated region fallthrough
CT: control target
= control target key end

     0   :  { %s105_s0 = inlined_call_operand.vmem [shape: f32[2,8,16,16], index: 0, kind: input, shape index: {}]   ;;  %s106_s1 = inlined_call_operand.vmem [shape: f32[2,8,16,16], index: 1, kind: input, shape index: {}]   ;;  %s107_s2 = inlined_call_operand.hbm [shape: c64[2,8,16,16], index: 2, kind: output, shape index: {}]  }
   0x1   :  { %s3_s11 = scalar_lea.hbm %s107_s2, 256 }
   0x2   :  { %4 = vsyncpa [#allocation0], 0  ;;  %s6_s14 = sshll.u32 %s105_s0, 4  ;;  %s8_s17 = sshll.u32 %s107_s2, 4  ;;  %s7_s14 = int_to_ptr.vmem [resolvable:$true] %s6_s14  ;;  %s9_s17 = int_to_ptr.hbm [resolvable:$true] %s8_s17 }
   0x3   :  { %11 = dma.vmem_to_hbm [thread:$0]  %s7_s14, 4096, %s9_s17, [#allocation0] }
   0x4   :  { %74 = dma.done.wait [#allocation0], 4096  }
   0x5   :  { %75 = vsyncadd [#allocation0], 4294963200 }
   0x6   :  { %14 = vsyncpa [#allocation0], 1 }
   0x7   :  { %15 = vsyncpa [#allocation1], 0  ;;  %s17_s20 = sshll.u32 %s106_s1, 4  ;;  %s19_s21 = sshll.u32 %s3_s11, 4  ;;  %s18_s20 = int_to_ptr.vmem [resolvable:$true] %s17_s20  ;;  %s20_s21 = int_to_ptr.hbm [resolvable:$true] %s19_s21 }
   0x8   :  { %22 = dma.vmem_to_hbm [thread:$0]  %s18_s20, 4096, %s20_s21, [#allocation1] }
   0x9   :  { %76 = dma.done.wait [#allocation1], 4096  }
   0xa   :  { %77 = vsyncadd [#allocation1], 4294963200 }
   0xb   :  { %25 = vsyncpa [#allocation1], 1 }

// kernel: gain_layer_forward.1
= control target key start
LH: loop header
LB: loop body
LE: loop exit
PB: predicated region body
PF: predicated region fallthrough
CT: control target
= control target key end

     0   :  { %vm17_vm0 = vcmask 64512   ;;  %s201_s0 = inlined_call_operand.vmem [shape: f32[8,512], index: 0, kind: input, shape index: {}]   ;;  %s202_s1 = inlined_call_operand.vmem [shape: f32[16,8], index: 1, kind: input, shape index: {}]   ;;  %s203_s2 = inlined_call_operand.vmem [shape: f32[16,512], index: 2, kind: output, shape index: {}]  }
   0x1   :  { %v15_v0 = vld [vmem:[%s201_s0 + $0x10] sm:$0xff]  ;;  %v16_v1 = vld [vmem:[%s201_s0 + $0x18] sm:$0xff]  ;;  %v11_v2 = vld [vmem:[%s202_s1] sm:$0xff] }
   0x2   :  { %85 = vmatpush.msra.mxu2 %v15_v0  ;;  %108 = vmatpush.msra.mxu3 %v16_v1  ;;  %v13_v3 = vld [vmem:[%s201_s0] sm:$0xff]  ;;  %v14_v4 = vld [vmem:[%s201_s0 + $0x8] sm:$0xff] }
   0x3   :  { %132 = vmatmul.msk.f32.vlgmr.msra.gmra.mxu2 %vm17_vm0, %v11_v2  ;;  %134 = vmatmul.msk.f32.vlgmr.msra.gmra.mxu3 %vm17_vm0, %v11_v2  ;;  %v12_v5 = vld [vmem:[%s202_s1 + $0x8] sm:$0xff] }
   0x4   :  { %39 = vmatpush.msra.mxu0 %v13_v3  ;;  %62 = vmatpush.msra.mxu1 %v14_v4 }
   0x5   :  { %128 = vmatmul.msk.f32.vlgmr.msra.gmra.mxu0 %vm17_vm0, %v11_v2  ;;  %130 = vmatmul.msk.f32.vlgmr.msra.gmra.mxu1 %vm17_vm0, %v11_v2 }
   0xb   :  { %133 = vmatmul.msk.f32.gmra.mxu2 %vm17_vm0, %v12_v5  ;;  %135 = vmatmul.msk.f32.gmra.mxu3 %vm17_vm0, %v12_v5 }
   0xd   :  { %129 = vmatmul.msk.f32.gmra.mxu0 %vm17_vm0, %v12_v5  ;;  %131 = vmatmul.msk.f32.gmra.mxu1 %vm17_vm0, %v12_v5 }
  0x82   :  { %v41_v6 = vpop.f32.mrf.mxu0  ;;  %v64_v7 = vpop.f32.mrf.mxu1 }
  0x83   :  { %116 = vst [vmem:[%s203_s2] sm:$0xff] %v41_v6 }
  0x84   :  { %117 = vst [vmem:[%s203_s2 + $0x8] sm:$0xff] %v64_v7 }
  0x86   :  { %v87_v8 = vpop.f32.mrf.mxu2  ;;  %v110_v9 = vpop.f32.mrf.mxu3 }
  0x87   :  { %118 = vst [vmem:[%s203_s2 + $0x10] sm:$0xff] %v87_v8 }
  0x88   :  { %119 = vst [vmem:[%s203_s2 + $0x18] sm:$0xff] %v110_v9 }
  0x8a   :  { %v44_v10 = vpop.f32.mrf.mxu0  ;;  %v67_v11 = vpop.f32.mrf.mxu1 }
  0x8b   :  { %120 = vst [vmem:[%s203_s2 + $0x20] sm:$0xff] %v44_v10 }
  0x8c   :  { %121 = vst [vmem:[%s203_s2 + $0x28] sm:$0xff] %v67_v11 }
  0x8e   :  { %v90_v12 = vpop.f32.mrf.mxu2  ;;  %v113_v13 = vpop.f32.mrf.mxu3 }
  0x8f   :  { %122 = vst [vmem:[%s203_s2 + $0x30] sm:$0xff] %v90_v12 }
  0x90   :  { %123 = vst [vmem:[%s203_s2 + $0x38] sm:$0xff] %v113_v13 }

</bundles_post_ra>
